<compile_context>
chip_gen: v7x
topology: tpu7x:2x2x1
jax: 0.10.0
libtpu: 0.0.40
codegen_flags: <defaults>
</compile_context>

<pallas_src>
import functools

import jax
import jax.numpy as jnp
from jax.experimental import pallas as pl
from jax.experimental.pallas import tpu as pltpu


def _sep_conv_kernel(x_ref, w_tap_ref, s1_ref, t1_ref, w_pw_ref, s2_ref,
                     t2_ref, o_ref, *, k, wp, th):
    """One (batch, row-tile) grid step.

    x_ref    : (1, 1, L, C)       flattened, zero-padded row tile (with halo),
                                  L = (th + 2*(k//2) + 1) * wp
    w_tap_ref: (k*k, C, C)        per-tap (Cin, Cout) matrices of the kxk conv
    s1,t1    : (1, C)             folded conv1 bias + BatchNorm1 scale / shift
    w_pw_ref : (C, O)             1x1 (pointwise) conv weight
    s2,t2    : (1, O)             folded conv2 bias + BatchNorm2 scale / shift
    o_ref    : (1, 1, th*wp, O)   output rows (full padded width; wrapper
                                  slices the valid W columns afterwards)
    """
    m = th * wp
    cin = w_tap_ref.shape[1]

    # k x k convolution = k*k shifted contiguous windows, each a 2-D MXU
    # matmul, accumulated in f32.  The window for tap (dy, dx) is simply the
    # flattened tile starting at offset dy*wp + dx (static).
    acc = jnp.zeros((m, cin), dtype=jnp.float32)
    for dy in range(k):
        for dx in range(k):
            start = dy * wp + dx
            win = x_ref[0, 0, start:start + m, :]           # (m, C) VMEM read
            acc = acc + jnp.dot(win, w_tap_ref[dy * k + dx],
                                preferred_element_type=jnp.float32)

    # conv1 bias + BatchNorm1 (eval) folded into a per-channel affine, + ReLU.
    h1 = jnp.maximum(acc * s1_ref[0] + t1_ref[0], 0.0)       # (m, C)

    # pointwise 1x1 conv + folded bias/BatchNorm2 + ReLU.
    out = jnp.dot(h1, w_pw_ref[...], preferred_element_type=jnp.float32)
    out = jnp.maximum(out * s2_ref[0] + t2_ref[0], 0.0)      # (m, O)

    o_ref[0, 0] = out.astype(o_ref.dtype)


def separable_conv2d(x, w_dw, b_dw, g1, beta1, rm1, rv1,
                     w_pw, b_pw, g2, beta2, rm2, rv2,
                     *, eps=1e-5, tile_rows=None,
                     vmem_limit_bytes=32 * 1024 * 1024):
    """x: (N, C, H, W) f32.  PyTorch parameter layouts:
       w_dw: (C, C, k, k), b_dw: (C,)   -- "depth_wise" Conv2d (full conv)
       g1, beta1, rm1, rv1: (C,)        -- BatchNorm2d(C) weight/bias/mean/var
       w_pw: (O, C, 1, 1), b_pw: (O,)   -- pointwise Conv2d
       g2, beta2, rm2, rv2: (O,)        -- BatchNorm2d(O)
    Returns (N, O, H, W)."""
    N, C, H, W = x.shape
    c_out, c_in, k, k2 = w_dw.shape
    assert c_in == C and c_out == C and k == k2 and k % 2 == 1, \
        "expects the module's Conv2d(C, C, k) with odd k"
    O = w_pw.shape[0]
    p = k // 2
    Wp = W + 2 * p

    # --- row-tile size heuristic: ~2 MiB of f32 rows per tile so that the
    # double-buffered in/out blocks stay well under the 32 MiB scoped-VMEM
    # default of v5e/v6e/v7x (v7x has only 64 MiB physical VMEM).
    if tile_rows is None:
        row_bytes = Wp * (C + O) * 4
        tile_rows = max(8, (2 * 1024 * 1024) // max(row_bytes, 1))
    TH = int(min(tile_rows, H))
    HT = -(-H // TH)                      # cdiv
    H_pad = HT * TH
    Hp_tot = H_pad + 2 * p + 1            # +1 spare zero row for the halo tail
    L = (TH + 2 * p + 1) * Wp             # flattened tile length (with halo)
    M = TH * Wp                           # flattened output rows per tile

    # --- wrapper glue: NCHW -> NHWC, zero pad (SAME padding + bottom fill),
    # flatten spatially and gather halo-overlapping row tiles.
    x_nhwc = jnp.transpose(x, (0, 2, 3, 1))                       # (N,H,W,C)
    x_padded = jnp.pad(x_nhwc,
                       ((0, 0), (p, H_pad - H + p + 1), (p, p), (0, 0)))
    x_flat = x_padded.reshape(N, Hp_tot * Wp, C)
    tile_idx = (jnp.arange(HT) * (TH * Wp))[:, None] + jnp.arange(L)[None, :]
    x_tiles = x_flat[:, tile_idx, :]                              # (N,HT,L,C)

    # --- weights: per-tap (Cin, Cout) matrices and pointwise (C, O).
    w_taps = jnp.transpose(w_dw, (2, 3, 1, 0)).reshape(k * k, C, C)
    w_point = jnp.transpose(w_pw[:, :, 0, 0], (1, 0))             # (C, O)

    # --- fold conv bias + eval-mode BatchNorm into per-channel scale/shift.
    s1 = g1 / jnp.sqrt(rv1 + eps)
    t1 = (b_dw - rm1) * s1 + beta1
    s2 = g2 / jnp.sqrt(rv2 + eps)
    t2 = (b_pw - rm2) * s2 + beta2

    kernel = functools.partial(_sep_conv_kernel, k=k, wp=Wp, th=TH)

    out = pl.pallas_call(
        kernel,
        out_shape=jax.ShapeDtypeStruct((N, HT, M, O), x.dtype),
        grid_spec=pltpu.PrefetchScalarGridSpec(
            num_scalar_prefetch=0,
            grid=(N, HT),
            in_specs=[
                pl.BlockSpec((1, 1, L, C), lambda n, h: (n, h, 0, 0)),
                pl.BlockSpec((k * k, C, C), lambda n, h: (0, 0, 0)),
                pl.BlockSpec((1, C), lambda n, h: (0, 0)),
                pl.BlockSpec((1, C), lambda n, h: (0, 0)),
                pl.BlockSpec((C, O), lambda n, h: (0, 0)),
                pl.BlockSpec((1, O), lambda n, h: (0, 0)),
                pl.BlockSpec((1, O), lambda n, h: (0, 0)),
            ],
            out_specs=pl.BlockSpec((1, 1, M, O), lambda n, h: (n, h, 0, 0)),
        ),
        compiler_params=pltpu.CompilerParams(
            dimension_semantics=("parallel", "parallel"),
            vmem_limit_bytes=vmem_limit_bytes),
    )(x_tiles, w_taps, s1.reshape(1, C), t1.reshape(1, C),
      w_point, s2.reshape(1, O), t2.reshape(1, O))

    # (N, HT, TH*Wp, O) -> (N, H_pad, Wp, O) -> crop padding -> NCHW
    out = out.reshape(N, H_pad, Wp, O)[:, :H, :W, :]
    return jnp.transpose(out, (0, 3, 1, 2))


def separable_conv2d_ref(x, w_dw, b_dw, g1, beta1, rm1, rv1,
                         w_pw, b_pw, g2, beta2, rm2, rv2, *, eps=1e-5):
    """Pure-JAX reference matching the PyTorch forward (eval-mode BN)."""
    k = w_dw.shape[-1]
    p = k // 2
    dn = ("NCHW", "OIHW", "NCHW")

    y = jax.lax.conv_general_dilated(x, w_dw, (1, 1), ((p, p), (p, p)),
                                     dimension_numbers=dn)
    y = y + b_dw[None, :, None, None]
    y = (g1[None, :, None, None] * (y - rm1[None, :, None, None])
         / jnp.sqrt(rv1 + eps)[None, :, None, None] + beta1[None, :, None, None])
    y = jnp.maximum(y, 0.0)

    z = jax.lax.conv_general_dilated(y, w_pw, (1, 1), ((0, 0), (0, 0)),
                                     dimension_numbers=dn)
    z = z + b_pw[None, :, None, None]
    z = (g2[None, :, None, None] * (z - rm2[None, :, None, None])
         / jnp.sqrt(rv2 + eps)[None, :, None, None] + beta2[None, :, None, None])
    return jnp.maximum(z, 0.0)


if __name__ == "__main__":
    # Small deterministic example: batch=2, C_in=4, C_out=8, spatial=16x16, k=3
    N, C, O, H, W, k = 2, 4, 8, 16, 16, 3

    key = jax.random.PRNGKey(0)
    ks = jax.random.split(key, 13)
    x = jax.random.normal(ks[0], (N, C, H, W), dtype=jnp.float32)
    w_dw = 0.1 * jax.random.normal(ks[1], (C, C, k, k), dtype=jnp.float32)
    b_dw = 0.1 * jax.random.normal(ks[2], (C,), dtype=jnp.float32)
    g1 = 1.0 + 0.1 * jax.random.normal(ks[3], (C,), dtype=jnp.float32)
    be1 = 0.1 * jax.random.normal(ks[4], (C,), dtype=jnp.float32)
    rm1 = 0.1 * jax.random.normal(ks[5], (C,), dtype=jnp.float32)
    rv1 = 1.0 + 0.1 * jnp.abs(jax.random.normal(ks[6], (C,), dtype=jnp.float32))
    w_pw = 0.1 * jax.random.normal(ks[7], (O, C, 1, 1), dtype=jnp.float32)
    b_pw = 0.1 * jax.random.normal(ks[8], (O,), dtype=jnp.float32)
    g2 = 1.0 + 0.1 * jax.random.normal(ks[9], (O,), dtype=jnp.float32)
    be2 = 0.1 * jax.random.normal(ks[10], (O,), dtype=jnp.float32)
    rm2 = 0.1 * jax.random.normal(ks[11], (O,), dtype=jnp.float32)
    rv2 = 1.0 + 0.1 * jnp.abs(jax.random.normal(ks[12], (O,), dtype=jnp.float32))

    out = jax.block_until_ready(
        separable_conv2d(x, w_dw, b_dw, g1, be1, rm1, rv1,
                         w_pw, b_pw, g2, be2, rm2, rv2, tile_rows=8))
    ref = jax.block_until_ready(
        separable_conv2d_ref(x, w_dw, b_dw, g1, be1, rm1, rv1,
                             w_pw, b_pw, g2, be2, rm2, rv2))

    assert out.shape == (N, O, H, W) and out.dtype == x.dtype
    max_err = float(jnp.max(jnp.abs(out - ref)))
    assert jnp.allclose(out, ref, atol=5e-3, rtol=5e-3), max_err
    print("KERNEL_OK")
</pallas_src>

<mosaic_0001>
module attributes {stable_mosaic.version = 11 : i64} {
  func.func @_sep_conv_kernel(%arg0: i32, %arg1: i32, %arg2: memref<1x1x198x4xf32, #tpu.memory_space<vmem>>, %arg3: memref<9x4x4xf32, #tpu.memory_space<vmem>>, %arg4: memref<1x4xf32, #tpu.memory_space<vmem>>, %arg5: memref<1x4xf32, #tpu.memory_space<vmem>>, %arg6: memref<4x8xf32, #tpu.memory_space<vmem>>, %arg7: memref<1x8xf32, #tpu.memory_space<vmem>>, %arg8: memref<1x8xf32, #tpu.memory_space<vmem>>, %arg9: memref<1x1x144x8xf32, #tpu.memory_space<vmem>>) attributes {dimension_semantics = [#tpu.dimension_semantics<parallel>, #tpu.dimension_semantics<parallel>], iteration_bounds = array<i64: 2, 2>, scalar_prefetch = 0 : i64, scratch_operands = 0 : i64, tpu.core_type = #tpu.core_type<tc>, window_params = [{transform_indices = @transform_0, window_bounds = array<i64: 1, 1, 198, 4>}, {pipeline_mode = #tpu.pipeline_mode<synchronous>, transform_indices = @transform_1, window_bounds = array<i64: 9, 4, 4>}, {pipeline_mode = #tpu.pipeline_mode<synchronous>, transform_indices = @transform_2, window_bounds = array<i64: 1, 4>}, {pipeline_mode = #tpu.pipeline_mode<synchronous>, transform_indices = @transform_3, window_bounds = array<i64: 1, 4>}, {pipeline_mode = #tpu.pipeline_mode<synchronous>, transform_indices = @transform_4, window_bounds = array<i64: 4, 8>}, {pipeline_mode = #tpu.pipeline_mode<synchronous>, transform_indices = @transform_5, window_bounds = array<i64: 1, 8>}, {pipeline_mode = #tpu.pipeline_mode<synchronous>, transform_indices = @transform_6, window_bounds = array<i64: 1, 8>}, {transform_indices = @transform_7, window_bounds = array<i64: 1, 1, 144, 8>}]} {
    %cst = arith.constant 0.000000e+00 : f32
    %0 = vector.broadcast %cst : f32 to vector<144x4xf32>
    %c0 = arith.constant 0 : index
    %c0_0 = arith.constant 0 : index
    %c0_1 = arith.constant 0 : index
    %c0_2 = arith.constant 0 : index
    %1 = vector.load %arg2[%c0, %c0_0, %c0_1, %c0_2] : memref<1x1x198x4xf32, #tpu.memory_space<vmem>>, vector<1x1x144x4xf32>
    %2 = vector.shape_cast %1 : vector<1x1x144x4xf32> to vector<144x4xf32>
    %c0_3 = arith.constant 0 : index
    %c0_4 = arith.constant 0 : index
    %c0_5 = arith.constant 0 : index
    %3 = vector.load %arg3[%c0_3, %c0_4, %c0_5] : memref<9x4x4xf32, #tpu.memory_space<vmem>>, vector<1x4x4xf32>
    %4 = vector.shape_cast %3 : vector<1x4x4xf32> to vector<4x4xf32>
    %cst_6 = arith.constant dense<0.000000e+00> : vector<144x4xf32>
    %5 = tpu.matmul %2, %4, %cst_6 {dimension_numbers = #tpu.dot_dimension_numbers<[1], [0], [0], [1], [0, 0, 1, 1], [], []>} : vector<144x4xf32>, vector<4x4xf32>, vector<144x4xf32> -> vector<144x4xf32>
    %6 = arith.addf %0, %5 : vector<144x4xf32>
    %c0_7 = arith.constant 0 : index
    %c0_8 = arith.constant 0 : index
    %c1 = arith.constant 1 : index
    %c0_9 = arith.constant 0 : index
    %7 = vector.load %arg2[%c0_7, %c0_8, %c1, %c0_9] : memref<1x1x198x4xf32, #tpu.memory_space<vmem>>, vector<1x1x144x4xf32>
    %8 = vector.shape_cast %7 : vector<1x1x144x4xf32> to vector<144x4xf32>
    %c1_10 = arith.constant 1 : index
    %c0_11 = arith.constant 0 : index
    %c0_12 = arith.constant 0 : index
    %9 = vector.load %arg3[%c1_10, %c0_11, %c0_12] : memref<9x4x4xf32, #tpu.memory_space<vmem>>, vector<1x4x4xf32>
    %10 = vector.shape_cast %9 : vector<1x4x4xf32> to vector<4x4xf32>
    %cst_13 = arith.constant dense<0.000000e+00> : vector<144x4xf32>
    %11 = tpu.matmul %8, %10, %cst_13 {dimension_numbers = #tpu.dot_dimension_numbers<[1], [0], [0], [1], [0, 0, 1, 1], [], []>} : vector<144x4xf32>, vector<4x4xf32>, vector<144x4xf32> -> vector<144x4xf32>
    %12 = arith.addf %6, %11 : vector<144x4xf32>
    %c0_14 = arith.constant 0 : index
    %c0_15 = arith.constant 0 : index
    %c2 = arith.constant 2 : index
    %c0_16 = arith.constant 0 : index
    %13 = vector.load %arg2[%c0_14, %c0_15, %c2, %c0_16] : memref<1x1x198x4xf32, #tpu.memory_space<vmem>>, vector<1x1x144x4xf32>
    %14 = vector.shape_cast %13 : vector<1x1x144x4xf32> to vector<144x4xf32>
    %c2_17 = arith.constant 2 : index
    %c0_18 = arith.constant 0 : index
    %c0_19 = arith.constant 0 : index
    %15 = vector.load %arg3[%c2_17, %c0_18, %c0_19] : memref<9x4x4xf32, #tpu.memory_space<vmem>>, vector<1x4x4xf32>
    %16 = vector.shape_cast %15 : vector<1x4x4xf32> to vector<4x4xf32>
    %cst_20 = arith.constant dense<0.000000e+00> : vector<144x4xf32>
    %17 = tpu.matmul %14, %16, %cst_20 {dimension_numbers = #tpu.dot_dimension_numbers<[1], [0], [0], [1], [0, 0, 1, 1], [], []>} : vector<144x4xf32>, vector<4x4xf32>, vector<144x4xf32> -> vector<144x4xf32>
    %18 = arith.addf %12, %17 : vector<144x4xf32>
    %c0_21 = arith.constant 0 : index
    %c0_22 = arith.constant 0 : index
    %c18 = arith.constant 18 : index
    %c0_23 = arith.constant 0 : index
    %19 = vector.load %arg2[%c0_21, %c0_22, %c18, %c0_23] : memref<1x1x198x4xf32, #tpu.memory_space<vmem>>, vector<1x1x144x4xf32>
    %20 = vector.shape_cast %19 : vector<1x1x144x4xf32> to vector<144x4xf32>
    %c3 = arith.constant 3 : index
    %c0_24 = arith.constant 0 : index
    %c0_25 = arith.constant 0 : index
    %21 = vector.load %arg3[%c3, %c0_24, %c0_25] : memref<9x4x4xf32, #tpu.memory_space<vmem>>, vector<1x4x4xf32>
    %22 = vector.shape_cast %21 : vector<1x4x4xf32> to vector<4x4xf32>
    %cst_26 = arith.constant dense<0.000000e+00> : vector<144x4xf32>
    %23 = tpu.matmul %20, %22, %cst_26 {dimension_numbers = #tpu.dot_dimension_numbers<[1], [0], [0], [1], [0, 0, 1, 1], [], []>} : vector<144x4xf32>, vector<4x4xf32>, vector<144x4xf32> -> vector<144x4xf32>
    %24 = arith.addf %18, %23 : vector<144x4xf32>
    %c0_27 = arith.constant 0 : index
    %c0_28 = arith.constant 0 : index
    %c19 = arith.constant 19 : index
    %c0_29 = arith.constant 0 : index
    %25 = vector.load %arg2[%c0_27, %c0_28, %c19, %c0_29] : memref<1x1x198x4xf32, #tpu.memory_space<vmem>>, vector<1x1x144x4xf32>
    %26 = vector.shape_cast %25 : vector<1x1x144x4xf32> to vector<144x4xf32>
    %c4 = arith.constant 4 : index
    %c0_30 = arith.constant 0 : index
    %c0_31 = arith.constant 0 : index
    %27 = vector.load %arg3[%c4, %c0_30, %c0_31] : memref<9x4x4xf32, #tpu.memory_space<vmem>>, vector<1x4x4xf32>
    %28 = vector.shape_cast %27 : vector<1x4x4xf32> to vector<4x4xf32>
    %cst_32 = arith.constant dense<0.000000e+00> : vector<144x4xf32>
    %29 = tpu.matmul %26, %28, %cst_32 {dimension_numbers = #tpu.dot_dimension_numbers<[1], [0], [0], [1], [0, 0, 1, 1], [], []>} : vector<144x4xf32>, vector<4x4xf32>, vector<144x4xf32> -> vector<144x4xf32>
    %30 = arith.addf %24, %29 : vector<144x4xf32>
    %c0_33 = arith.constant 0 : index
    %c0_34 = arith.constant 0 : index
    %c20 = arith.constant 20 : index
    %c0_35 = arith.constant 0 : index
    %31 = vector.load %arg2[%c0_33, %c0_34, %c20, %c0_35] : memref<1x1x198x4xf32, #tpu.memory_space<vmem>>, vector<1x1x144x4xf32>
    %32 = vector.shape_cast %31 : vector<1x1x144x4xf32> to vector<144x4xf32>
    %c5 = arith.constant 5 : index
    %c0_36 = arith.constant 0 : index
    %c0_37 = arith.constant 0 : index
    %33 = vector.load %arg3[%c5, %c0_36, %c0_37] : memref<9x4x4xf32, #tpu.memory_space<vmem>>, vector<1x4x4xf32>
    %34 = vector.shape_cast %33 : vector<1x4x4xf32> to vector<4x4xf32>
    %cst_38 = arith.constant dense<0.000000e+00> : vector<144x4xf32>
    %35 = tpu.matmul %32, %34, %cst_38 {dimension_numbers = #tpu.dot_dimension_numbers<[1], [0], [0], [1], [0, 0, 1, 1], [], []>} : vector<144x4xf32>, vector<4x4xf32>, vector<144x4xf32> -> vector<144x4xf32>
    %36 = arith.addf %30, %35 : vector<144x4xf32>
    %c0_39 = arith.constant 0 : index
    %c0_40 = arith.constant 0 : index
    %c36 = arith.constant 36 : index
    %c0_41 = arith.constant 0 : index
    %37 = vector.load %arg2[%c0_39, %c0_40, %c36, %c0_41] : memref<1x1x198x4xf32, #tpu.memory_space<vmem>>, vector<1x1x144x4xf32>
    %38 = vector.shape_cast %37 : vector<1x1x144x4xf32> to vector<144x4xf32>
    %c6 = arith.constant 6 : index
    %c0_42 = arith.constant 0 : index
    %c0_43 = arith.constant 0 : index
    %39 = vector.load %arg3[%c6, %c0_42, %c0_43] : memref<9x4x4xf32, #tpu.memory_space<vmem>>, vector<1x4x4xf32>
    %40 = vector.shape_cast %39 : vector<1x4x4xf32> to vector<4x4xf32>
    %cst_44 = arith.constant dense<0.000000e+00> : vector<144x4xf32>
    %41 = tpu.matmul %38, %40, %cst_44 {dimension_numbers = #tpu.dot_dimension_numbers<[1], [0], [0], [1], [0, 0, 1, 1], [], []>} : vector<144x4xf32>, vector<4x4xf32>, vector<144x4xf32> -> vector<144x4xf32>
    %42 = arith.addf %36, %41 : vector<144x4xf32>
    %c0_45 = arith.constant 0 : index
    %c0_46 = arith.constant 0 : index
    %c37 = arith.constant 37 : index
    %c0_47 = arith.constant 0 : index
    %43 = vector.load %arg2[%c0_45, %c0_46, %c37, %c0_47] : memref<1x1x198x4xf32, #tpu.memory_space<vmem>>, vector<1x1x144x4xf32>
    %44 = vector.shape_cast %43 : vector<1x1x144x4xf32> to vector<144x4xf32>
    %c7 = arith.constant 7 : index
    %c0_48 = arith.constant 0 : index
    %c0_49 = arith.constant 0 : index
    %45 = vector.load %arg3[%c7, %c0_48, %c0_49] : memref<9x4x4xf32, #tpu.memory_space<vmem>>, vector<1x4x4xf32>
    %46 = vector.shape_cast %45 : vector<1x4x4xf32> to vector<4x4xf32>
    %cst_50 = arith.constant dense<0.000000e+00> : vector<144x4xf32>
    %47 = tpu.matmul %44, %46, %cst_50 {dimension_numbers = #tpu.dot_dimension_numbers<[1], [0], [0], [1], [0, 0, 1, 1], [], []>} : vector<144x4xf32>, vector<4x4xf32>, vector<144x4xf32> -> vector<144x4xf32>
    %48 = arith.addf %42, %47 : vector<144x4xf32>
    %c0_51 = arith.constant 0 : index
    %c0_52 = arith.constant 0 : index
    %c38 = arith.constant 38 : index
    %c0_53 = arith.constant 0 : index
    %49 = vector.load %arg2[%c0_51, %c0_52, %c38, %c0_53] : memref<1x1x198x4xf32, #tpu.memory_space<vmem>>, vector<1x1x144x4xf32>
    %50 = vector.shape_cast %49 : vector<1x1x144x4xf32> to vector<144x4xf32>
    %c8 = arith.constant 8 : index
    %c0_54 = arith.constant 0 : index
    %c0_55 = arith.constant 0 : index
    %51 = vector.load %arg3[%c8, %c0_54, %c0_55] : memref<9x4x4xf32, #tpu.memory_space<vmem>>, vector<1x4x4xf32>
    %52 = vector.shape_cast %51 : vector<1x4x4xf32> to vector<4x4xf32>
    %cst_56 = arith.constant dense<0.000000e+00> : vector<144x4xf32>
    %53 = tpu.matmul %50, %52, %cst_56 {dimension_numbers = #tpu.dot_dimension_numbers<[1], [0], [0], [1], [0, 0, 1, 1], [], []>} : vector<144x4xf32>, vector<4x4xf32>, vector<144x4xf32> -> vector<144x4xf32>
    %54 = arith.addf %48, %53 : vector<144x4xf32>
    %c0_57 = arith.constant 0 : index
    %c0_58 = arith.constant 0 : index
    %55 = vector.load %arg4[%c0_57, %c0_58] : memref<1x4xf32, #tpu.memory_space<vmem>>, vector<1x4xf32>
    %56 = vector.shape_cast %55 : vector<1x4xf32> to vector<4xf32>
    %57 = vector.shape_cast %56 : vector<4xf32> to vector<1x4xf32>
    %58 = vector.broadcast %57 : vector<1x4xf32> to vector<144x4xf32>
    %59 = arith.mulf %54, %58 : vector<144x4xf32>
    %c0_59 = arith.constant 0 : index
    %c0_60 = arith.constant 0 : index
    %60 = vector.load %arg5[%c0_59, %c0_60] : memref<1x4xf32, #tpu.memory_space<vmem>>, vector<1x4xf32>
    %61 = vector.shape_cast %60 : vector<1x4xf32> to vector<4xf32>
    %62 = vector.shape_cast %61 : vector<4xf32> to vector<1x4xf32>
    %63 = vector.broadcast %62 : vector<1x4xf32> to vector<144x4xf32>
    %64 = arith.addf %59, %63 : vector<144x4xf32>
    %cst_61 = arith.constant 0.000000e+00 : f32
    %65 = vector.broadcast %cst_61 : f32 to vector<144x4xf32>
    %66 = arith.maximumf %64, %65 : vector<144x4xf32>
    %c0_62 = arith.constant 0 : index
    %c0_63 = arith.constant 0 : index
    %67 = vector.load %arg6[%c0_62, %c0_63] : memref<4x8xf32, #tpu.memory_space<vmem>>, vector<4x8xf32>
    %cst_64 = arith.constant dense<0.000000e+00> : vector<144x8xf32>
    %68 = tpu.matmul %66, %67, %cst_64 {dimension_numbers = #tpu.dot_dimension_numbers<[1], [0], [0], [1], [0, 0, 1, 1], [], []>} : vector<144x4xf32>, vector<4x8xf32>, vector<144x8xf32> -> vector<144x8xf32>
    %c0_65 = arith.constant 0 : index
    %c0_66 = arith.constant 0 : index
    %69 = vector.load %arg7[%c0_65, %c0_66] : memref<1x8xf32, #tpu.memory_space<vmem>>, vector<1x8xf32>
    %70 = vector.shape_cast %69 : vector<1x8xf32> to vector<8xf32>
    %71 = vector.shape_cast %70 : vector<8xf32> to vector<1x8xf32>
    %72 = vector.broadcast %71 : vector<1x8xf32> to vector<144x8xf32>
    %73 = arith.mulf %68, %72 : vector<144x8xf32>
    %c0_67 = arith.constant 0 : index
    %c0_68 = arith.constant 0 : index
    %74 = vector.load %arg8[%c0_67, %c0_68] : memref<1x8xf32, #tpu.memory_space<vmem>>, vector<1x8xf32>
    %75 = vector.shape_cast %74 : vector<1x8xf32> to vector<8xf32>
    %76 = vector.shape_cast %75 : vector<8xf32> to vector<1x8xf32>
    %77 = vector.broadcast %76 : vector<1x8xf32> to vector<144x8xf32>
    %78 = arith.addf %73, %77 : vector<144x8xf32>
    %cst_69 = arith.constant 0.000000e+00 : f32
    %79 = vector.broadcast %cst_69 : f32 to vector<144x8xf32>
    %80 = arith.maximumf %78, %79 : vector<144x8xf32>
    %c0_70 = arith.constant 0 : index
    %c0_71 = arith.constant 0 : index
    %c0_72 = arith.constant 0 : index
    %c0_73 = arith.constant 0 : index
    %81 = vector.load %arg9[%c0_70, %c0_71, %c0_72, %c0_73] : memref<1x1x144x8xf32, #tpu.memory_space<vmem>>, vector<1x1x144x8xf32>
    %82 = vector.shape_cast %81 : vector<1x1x144x8xf32> to vector<144x8xf32>
    %83 = vector.shape_cast %80 : vector<144x8xf32> to vector<1x1x144x8xf32>
    tpu.vector_store %arg9[%c0_70, %c0_71, %c0_72, %c0_73], %83 {strides = array<i32>} : memref<1x1x144x8xf32, #tpu.memory_space<vmem>>, vector<1x1x144x8xf32>,
    return
  }
  func.func @transform_0(%arg0: i32, %arg1: i32) -> (i32, i32, i32, i32) {
    %c0_i32 = arith.constant 0 : i32
    %c0_i32_0 = arith.constant 0 : i32
    %c0_i32_1 = arith.constant 0 : i32
    return %arg0, %arg1, %c0_i32, %c0_i32_0 : i32, i32, i32, i32
  }
  func.func @transform_1(%arg0: i32, %arg1: i32) -> (i32, i32, i32) {
    %c0_i32 = arith.constant 0 : i32
    %c0_i32_0 = arith.constant 0 : i32
    %c0_i32_1 = arith.constant 0 : i32
    %c0_i32_2 = arith.constant 0 : i32
    return %c0_i32, %c0_i32_0, %c0_i32_1 : i32, i32, i32
  }
  func.func @transform_2(%arg0: i32, %arg1: i32) -> (i32, i32) {
    %c0_i32 = arith.constant 0 : i32
    %c0_i32_0 = arith.constant 0 : i32
    %c0_i32_1 = arith.constant 0 : i32
    return %c0_i32, %c0_i32_0 : i32, i32
  }
  func.func @transform_3(%arg0: i32, %arg1: i32) -> (i32, i32) {
    %c0_i32 = arith.constant 0 : i32
    %c0_i32_0 = arith.constant 0 : i32
    %c0_i32_1 = arith.constant 0 : i32
    return %c0_i32, %c0_i32_0 : i32, i32
  }
  func.func @transform_4(%arg0: i32, %arg1: i32) -> (i32, i32) {
    %c0_i32 = arith.constant 0 : i32
    %c0_i32_0 = arith.constant 0 : i32
    %c0_i32_1 = arith.constant 0 : i32
    return %c0_i32, %c0_i32_0 : i32, i32
  }
  func.func @transform_5(%arg0: i32, %arg1: i32) -> (i32, i32) {
    %c0_i32 = arith.constant 0 : i32
    %c0_i32_0 = arith.constant 0 : i32
    %c0_i32_1 = arith.constant 0 : i32
    return %c0_i32, %c0_i32_0 : i32, i32
  }
  func.func @transform_6(%arg0: i32, %arg1: i32) -> (i32, i32) {
    %c0_i32 = arith.constant 0 : i32
    %c0_i32_0 = arith.constant 0 : i32
    %c0_i32_1 = arith.constant 0 : i32
    return %c0_i32, %c0_i32_0 : i32, i32
  }
  func.func @transform_7(%arg0: i32, %arg1: i32) -> (i32, i32, i32, i32) {
    %c0_i32 = arith.constant 0 : i32
    %c0_i32_0 = arith.constant 0 : i32
    %c0_i32_1 = arith.constant 0 : i32
    return %arg0, %arg1, %c0_i32, %c0_i32_0 : i32, i32, i32, i32
  }
}

</mosaic_0001>

<bundles_post_ra>
// kernel: tpu_custom_call.1
= control target key start
LH: loop header
LB: loop body
LE: loop exit
PB: predicated region body
PF: predicated region fallthrough
CT: control target
= control target key end

     0   :  { %s3952_s24 = smov 0   ;;  %s3954_s25 = smov 0   ;;  %s4579_s0 = inlined_call_operand.vmem [shape: f32[2,2,198,4], index: 0, kind: input, shape index: {}]   ;;  %s4580_s1 = inlined_call_operand.vmem [shape: f32[9,4,4], index: 1, kind: input, shape index: {}]   ;;  %s4581_s2 = inlined_call_operand.vmem [shape: f32[1,4], index: 2, kind: input, shape index: {}]   ;;  %s4582_s3 = inlined_call_operand.vmem [shape: f32[1,4], index: 3, kind: input, shape index: {}]   ;;  %s4583_s4 = inlined_call_operand.vmem [shape: f32[4,8], index: 4, kind: input, shape index: {}]   ;;  %s4584_s5 = inlined_call_operand.vmem [shape: f32[1,8], index: 5, kind: input, shape index: {}]   ;;  %s4585_s6 = inlined_call_operand.vmem [shape: f32[1,8], index: 6, kind: input, shape index: {}]   ;;  %s4586_s7 = inlined_call_operand.vmem [shape: f32[2,2,144,8], index: 7, kind: output, shape index: {}]  }
   0x1   :  { %s3956_s26 = smov 0   ;;  %s3958_s27 = smov 0  }
   0x2   :  { %s3960_s28 = smov 0  }
   0x3 LB: > { %s26_s29 = sadd.s32 1, %s3902_s26  ;;  %s29_s30 = sadd.s32 1, %s3906_s27  ;;  %s3910_s28 = sphi %s3960_s28, %s17_s28   ;;  %s3906_s27 = sphi %s3958_s27, %s4590_s27   ;;  %s3902_s26 = sphi %s3956_s26, %s4589_s26   ;;  %s3898_s25 = sphi %s3954_s25, %s4588_s25   ;;  %s3894_s24 = sphi %s3952_s24, %s4587_s24  }
   0x4   : > { %p27_p0 = scmp.ge.s32.totalorder %s26_s29, 2  ;;  %p2997_p1 = scmp.ge.s32.totalorder %s3910_s28, 1 }
   0x5   : > { %p257_p2 = scmp.lt.s32.totalorder %s3910_s28, 5 }
   0x6   : > { %s4592_s29 = smov (%p27_p0, %s26_s29), 0  ;;  %s4594_s30 = smov (!%p27_p0, %s29_s30), %s3906_s27 }
   0x7   : > { %p258_p3 = pnand %p2997_p1, %p257_p2  ;;  %p31_p4 = scmp.ge.s32.totalorder %s4594_s30, 2 }
   0x8   : > { %vm409_vm0 = vcmask (!%p258_p3), 1043456   ;;  %v3079_v0 = vld [vmem:[%s4580_s1 + $0x10] sm:$0xf] (!%p258_p3)  ;;  %v3000_v1 = vld [vmem:[%s4580_s1 + $0x4] sm:$0xf] (!%p258_p3)  ;;  %p297_p5 = scmp.lt.s32.totalorder (!%p258_p3), %s3898_s25, 1 }
   0x9   : > { %s4596_s30 = smov (%p31_p4, %s4594_s30), 0  ;;  %261 = sbr.rel (%p258_p3) target bundleno = 643 (0x283), region = 48 }
   0xa   : > { %3510 = vmatprep.subr.msk.mxu0 (!%p258_p3), %vm409_vm0, %v3079_v0  ;;  %3394 = vmatprep.subr.msk.mxu1 (!%p258_p3), %vm409_vm0, %v3000_v1  ;;  %p299_p6 = scmp.lt.s32.totalorder (!%p258_p3), %s3894_s24, 1  ;;  %v3099_v2 = vld [vmem:[%s4580_s1 + $0x14] sm:$0xf] (!%p258_p3)  ;;  %v333_v3 = vld [vmem:[%s4580_s1] sm:$0xf] (!%p258_p3)  ;;  %vm354_vm1 = vcmask (!%p258_p3), 31744  }
   0xb   : > { %3511 = vmatpush3.msk.msra.mxu0 (!%p258_p3), %vm409_vm0, %v3079_v0  ;;  %3395 = vmatpush3.msk.msra.mxu1 (!%p258_p3), %vm409_vm0, %v3000_v1  ;;  %v4024_v10 = vld [vmem:[%s4580_s1 + $0x18] sm:$0xf] (!%p258_p3)  ;;  %v4029_v11 = vld [vmem:[%s4580_s1 + $0x8] sm:$0xf] (!%p258_p3)  ;;  %v4114_v48 = vld [vmem:[%s4580_s1 + $0x1c] sm:$0xf] (!%p258_p3) }
   0xc   : > { %3539 = vmatprep.subr.msk.mxu0 (!%p258_p3), %vm409_vm0, %v3099_v2  ;;  %3423 = vmatprep.subr.msk.mxu1 (!%p258_p3), %vm409_vm0, %v333_v3  ;;  %v4119_v49 = vld [vmem:[%s4580_s1 + $0xc] sm:$0xf] (!%p258_p3)  ;;  %vm2879_vm2 = vcmask (!%p258_p3), 64512  }
  0x10   : > { %s4598_s25 = smov (!%p297_p5, %s3898_s25), 1  ;;  %s4600_s24 = smov (!%p299_p6, %s3894_s24), 1 }
  0x11   : > { %s3829_s16 = smul.u32 50, %s4598_s25 }
  0x12   : > { %s3828_s17 = smul.u32 25, %s4600_s24 }
  0x13   : > { %s3830_s23 = smul.u32 18, %s4600_s24 }
  0x14   : > { %s303_s18 = sadd.s32 %s3829_s16, %s3828_s17  ;;  %s3831_s8 = smul.u32 36, %s4598_s25 }
  0x15   : > { %s2998_s19 = sshll.u32 %s303_s18, 3 }
  0x16   : > { %s4009_s22 = scalar_lea.vmem %s4579_s0, %s2998_s19  ;;  %s312_s9 = sadd.s32 %s3831_s8, %s3830_s23 }
  0x17   : > { %v334_v4 = vld [vmem:[%s4009_s22 + $0x1] sm:$0xff]  ;;  %v1280_v5 = vld [vmem:[%s4009_s22 + $0x13] sm:$0xff]  ;;  %v335_v6 = vld [vmem:[%s4009_s22 + $0x9] sm:$0xff]  ;;  %s2999_s14 = sshll.u32 %s312_s9, 3 }
  0x18   : > { %3396 = vmatprep.mubr.msk.f32.mxu1 %vm354_vm1, %v334_v4  ;;  %3512 = vmatprep.mubr.msk.f32.mxu0 %vm354_vm1, %v1280_v5  ;;  %v1281_v7 = vld [vmem:[%s4009_s22 + $0x1b] sm:$0xff]  ;;  %v336_v8 = vld [vmem:[%s4009_s22 + $0x11] sm:$0xff]  ;;  %v1282_v9 = vld [vmem:[%s4009_s22 + $0x23] sm:$0xff]  ;;  %s4493_s15 = scalar_lea.vmem %s4586_s7, %s2999_s14 }
  0x19   : > { %3397 = vmatmul.mubr.msk.f32.vlgmr.msra.gmra.mrb[0].mxu1 %vm354_vm1, %v335_v6  ;;  %3513 = vmatmul.mubr.msk.f32.vlgmr.msra.gmra.mrb[0].mxu0 %vm354_vm1, %v1281_v7  ;;  %v337_v12 = vld [vmem:[%s4009_s22 + $0x19] sm:$0xff]  ;;  %v1283_v13 = vld [vmem:[%s4009_s22 + $0x2b] sm:$0xff]  ;;  %v338_v14 = vld [vmem:[%s4009_s22 + $0x21] sm:$0xff] }
  0x1a   : > { %3540 = vmatpush3.msk.msra.mxu0 %vm409_vm0, %v3099_v2  ;;  %3399 = vmatprep.mubr.msk.f32.mxu1 %vm354_vm1, %v336_v8  ;;  %v1284_v15 = vld [vmem:[%s4009_s22 + $0x33] sm:$0xff]  ;;  %v339_v16 = vld [vmem:[%s4009_s22 + $0x29] sm:$0xff]  ;;  %v1285_v17 = vld [vmem:[%s4009_s22 + $0x3b] sm:$0xff] }
  0x1b   : > { %3515 = vmatprep.mubr.msk.f32.mxu0 %vm354_vm1, %v1282_v9  ;;  %3424 = vmatpush3.msk.msra.mxu1 %vm409_vm0, %v333_v3  ;;  %v340_v18 = vld [vmem:[%s4009_s22 + $0x31] sm:$0xff]  ;;  %v1286_v19 = vld [vmem:[%s4009_s22 + $0x43] sm:$0xff]  ;;  %v341_v20 = vld [vmem:[%s4009_s22 + $0x39] sm:$0xff] }
  0x1c   : > { %3568 = vmatprep.subr.msk.mxu0 %vm409_vm0, %v4024_v10  ;;  %3452 = vmatprep.subr.msk.mxu1 %vm409_vm0, %v4029_v11  ;;  %v1287_v21 = vld [vmem:[%s4009_s22 + $0x4b] sm:$0xff]  ;;  %v342_v22 = vld [vmem:[%s4009_s22 + $0x41] sm:$0xff]  ;;  %v1288_v23 = vld [vmem:[%s4009_s22 + $0x53] sm:$0xff] }
  0x1d   : > { %3400 = vmatmul.mubr.msk.f32.gmra.mrb[2].mxu1 %vm354_vm1, %v337_v12  ;;  %3516 = vmatmul.mubr.msk.f32.gmra.mrb[2].mxu0 %vm354_vm1, %v1283_v13  ;;  %v343_v24 = vld [vmem:[%s4009_s22 + $0x49] sm:$0xff]  ;;  %v1289_v25 = vld [vmem:[%s4009_s22 + $0x5b] sm:$0xff]  ;;  %v344_v26 = vld [vmem:[%s4009_s22 + $0x51] sm:$0xff] }
  0x1e   : > { %3402 = vmatprep.mubr.msk.f32.mxu1 %vm354_vm1, %v338_v14  ;;  %3518 = vmatprep.mubr.msk.f32.mxu0 %vm354_vm1, %v1284_v15  ;;  %v1290_v27 = vld [vmem:[%s4009_s22 + $0x63] sm:$0xff]  ;;  %v345_v28 = vld [vmem:[%s4009_s22 + $0x59] sm:$0xff]  ;;  %v1291_v29 = vld [vmem:[%s4009_s22 + $0x6b] sm:$0xff] }
  0x1f   : > { %v346_v30 = vld [vmem:[%s4009_s22 + $0x61] sm:$0xff]  ;;  %v1292_v31 = vld [vmem:[%s4009_s22 + $0x73] sm:$0xff]  ;;  %v347_v32 = vld [vmem:[%s4009_s22 + $0x69] sm:$0xff] }
  0x20   : > { %v1293_v33 = vld [vmem:[%s4009_s22 + $0x7b] sm:$0xff]  ;;  %v348_v34 = vld [vmem:[%s4009_s22 + $0x71] sm:$0xff]  ;;  %v1294_v35 = vld [vmem:[%s4009_s22 + $0x83] sm:$0xff] }
  0x21   : > { %3403 = vmatmul.mubr.msk.f32.gmra.mrb[4].mxu1 %vm354_vm1, %v339_v16  ;;  %3519 = vmatmul.mubr.msk.f32.gmra.mrb[4].mxu0 %vm354_vm1, %v1285_v17  ;;  %v349_v36 = vld [vmem:[%s4009_s22 + $0x79] sm:$0xff]  ;;  %v1295_v37 = vld [vmem:[%s4009_s22 + $0x8b] sm:$0xff]  ;;  %v350_v38 = vld [vmem:[%s4009_s22 + $0x81] sm:$0xff] }
  0x22   : > { %3405 = vmatprep.mubr.msk.f32.mxu1 %vm354_vm1, %v340_v18  ;;  %3521 = vmatprep.mubr.msk.f32.mxu0 %vm354_vm1, %v1286_v19  ;;  %v1296_v39 = vld [vmem:[%s4009_s22 + $0x93] sm:$0xff]  ;;  %v351_v40 = vld [vmem:[%s4009_s22 + $0x89] sm:$0xff]  ;;  %v1297_v41 = vld [vmem:[%s4009_s22 + $0x9b] sm:$0xff] }
  0x23   : > { %v315_v42 = vld [vmem:[%s4009_s22] sm:$0xff]  ;;  %v1530_v43 = vld [vmem:[%s4009_s22 + $0x14] sm:$0xff]  ;;  %v316_v44 = vld [vmem:[%s4009_s22 + $0x8] sm:$0xff] }
  0x24   : > { %v1531_v45 = vld [vmem:[%s4009_s22 + $0x1c] sm:$0xff]  ;;  %v317_v46 = vld [vmem:[%s4009_s22 + $0x10] sm:$0xff]  ;;  %v4107_v47 = vld [vmem:[%s4009_s22 + $0x24] sm:$0xff] }
  0x25   : > { %3406 = vmatmul.mubr.msk.f32.gmra.mrb[6].mxu1 %vm354_vm1, %v341_v20  ;;  %3522 = vmatmul.mubr.msk.f32.gmra.mrb[6].mxu0 %vm354_vm1, %v1287_v21  ;;  %v318_v50 = vld [vmem:[%s4009_s22 + $0x18] sm:$0xff]  ;;  %v4126_v51 = vld [vmem:[%s4009_s22 + $0x2c] sm:$0xff]  ;;  %v319_v52 = vld [vmem:[%s4009_s22 + $0x20] sm:$0xff] }
  0x26   : > { %3408 = vmatprep.mubr.msk.f32.mxu1 %vm354_vm1, %v342_v22  ;;  %3524 = vmatprep.mubr.msk.f32.mxu0 %vm354_vm1, %v1288_v23  ;;  %v4132_v53 = vld [vmem:[%s4009_s22 + $0x34] sm:$0xff]  ;;  %v320_v54 = vld [vmem:[%s4009_s22 + $0x28] sm:$0xff]  ;;  %v4148_v55 = vld [vmem:[%s4009_s22 + $0x3c] sm:$0xff] }
  0x27   : > { %v321_v56 = vld [vmem:[%s4009_s22 + $0x30] sm:$0xff]  ;;  %v4152_v57 = vld [vmem:[%s4009_s22 + $0x44] sm:$0xff]  ;;  %v322_v58 = vld [vmem:[%s4009_s22 + $0x38] sm:$0xff] }
  0x28   : > { %v4162_v59 = vld [vmem:[%s4009_s22 + $0x4c] sm:$0xff]  ;;  %v323_v60 = vld [vmem:[%s4009_s22 + $0x40] sm:$0xff]  ;;  %v4166_v61 = vld [vmem:[%s4009_s22 + $0x54] sm:$0xff] }
  0x29   : > { %3409 = vmatmul.mubr.msk.f32.gmra.mrb[8].mxu1 %vm354_vm1, %v343_v24  ;;  %3525 = vmatmul.mubr.msk.f32.gmra.mrb[8].mxu0 %vm354_vm1, %v1289_v25  ;;  %v324_v62 = vld [vmem:[%s4009_s22 + $0x48] sm:$0xff]  ;;  %v4176_v63 = vld [vmem:[%s4009_s22 + $0x5c] sm:$0xff]  ;;  %v325_v0 = vld [vmem:[%s4009_s22 + $0x50] sm:$0xff] }
  0x2a   : > { %3411 = vmatprep.mubr.msk.f32.mxu1 %vm354_vm1, %v344_v26  ;;  %3527 = vmatprep.mubr.msk.f32.mxu0 %vm354_vm1, %v1290_v27  ;;  %v4180_v1 = vld [vmem:[%s4009_s22 + $0x64] sm:$0xff]  ;;  %v326_v2 = vld [vmem:[%s4009_s22 + $0x58] sm:$0xff]  ;;  %v1541_v3 = vld [vmem:[%s4009_s22 + $0x6c] sm:$0xff] }
  0x2b   : > { %v327_v4 = vld [vmem:[%s4009_s22 + $0x60] sm:$0xff]  ;;  %v1542_v5 = vld [vmem:[%s4009_s22 + $0x74] sm:$0xff]  ;;  %v328_v6 = vld [vmem:[%s4009_s22 + $0x68] sm:$0xff] }
  0x2c   : > { %v1543_v7 = vld [vmem:[%s4009_s22 + $0x7c] sm:$0xff]  ;;  %v329_v8 = vld [vmem:[%s4009_s22 + $0x70] sm:$0xff]  ;;  %v1544_v9 = vld [vmem:[%s4009_s22 + $0x84] sm:$0xff] }
  0x2d   : > { %3412 = vmatmul.mubr.msk.f32.gmra.mrb[10].mxu1 %vm354_vm1, %v345_v28  ;;  %3528 = vmatmul.mubr.msk.f32.gmra.mrb[10].mxu0 %vm354_vm1, %v1291_v29  ;;  %v331_v12 = vld [vmem:[%s4009_s22 + $0x80] sm:$0xff]  ;;  %v1546_v13 = vld [vmem:[%s4009_s22 + $0x94] sm:$0xff]  ;;  %v332_v14 = vld [vmem:[%s4009_s22 + $0x88] sm:$0xff] }
  0x2e   : > { %3414 = vmatprep.mubr.msk.f32.mxu1 %vm354_vm1, %v346_v30  ;;  %3530 = vmatprep.mubr.msk.f32.mxu0 %vm354_vm1, %v1292_v31  ;;  %v1547_v15 = vld [vmem:[%s4009_s22 + $0x9c] sm:$0xff]  ;;  %v781_v17 = vld [vmem:[%s4009_s22 + $0xa] sm:$0xff]  ;;  %v782_v18 = vld [vmem:[%s4009_s22 + $0x12] sm:$0xff] }
  0x2f   : > { %v780_v16 = vld [vmem:[%s4009_s22 + $0x2] sm:$0xff]  ;;  %v783_v20 = vld [vmem:[%s4009_s22 + $0x1a] sm:$0xff]  ;;  %v785_v22 = vld [vmem:[%s4009_s22 + $0x2a] sm:$0xff] }
  0x30   : > { %v3159_v19 = vld [vmem:[%s4580_s1 + $0x20] sm:$0xf]  ;;  %v786_v23 = vld [vmem:[%s4009_s22 + $0x32] sm:$0xff]  ;;  %v789_v26 = vld [vmem:[%s4009_s22 + $0x4a] sm:$0xff] }
  0x31   : > { %3415 = vmatmul.mubr.msk.f32.gmra.mrb[12].mxu1 %vm354_vm1, %v347_v32  ;;  %3531 = vmatmul.mubr.msk.f32.gmra.mrb[12].mxu0 %vm354_vm1, %v1293_v33  ;;  %v784_v21 = vld [vmem:[%s4009_s22 + $0x22] sm:$0xff]  ;;  %v787_v24 = vld [vmem:[%s4009_s22 + $0x3a] sm:$0xff]  ;;  %v790_v27 = vld [vmem:[%s4009_s22 + $0x52] sm:$0xff] }
  0x32   : > { %3417 = vmatprep.mubr.msk.f32.mxu1 %vm354_vm1, %v348_v34  ;;  %3533 = vmatprep.mubr.msk.f32.mxu0 %vm354_vm1, %v1294_v35  ;;  %v788_v25 = vld [vmem:[%s4009_s22 + $0x42] sm:$0xff]  ;;  %v791_v28 = vld [vmem:[%s4009_s22 + $0x5a] sm:$0xff]  ;;  %v793_v30 = vld [vmem:[%s4009_s22 + $0x6a] sm:$0xff] }
  0x33   : > { %v792_v29 = vld [vmem:[%s4009_s22 + $0x62] sm:$0xff]  ;;  %v794_v31 = vld [vmem:[%s4009_s22 + $0x72] sm:$0xff]  ;;  %v795_v32 = vld [vmem:[%s4009_s22 + $0x7a] sm:$0xff] }
  0x34   : > { %v796_v33 = vld [vmem:[%s4009_s22 + $0x82] sm:$0xff]  ;;  %v797_v35 = vld [vmem:[%s4009_s22 + $0x8a] sm:$0xff] }
  0x35   : > { %3418 = vmatmul.mubr.msk.f32.gmra.mrb[14].mxu1 %vm354_vm1, %v349_v36  ;;  %3534 = vmatmul.mubr.msk.f32.gmra.mrb[14].mxu0 %vm354_vm1, %v1295_v37  ;;  %v1796_v34 = vld [vmem:[%s4009_s22 + $0xa4] sm:$0xff]  ;;  %v1797_v36 = vld [vmem:[%s4009_s22 + $0xac] sm:$0xff] }
  0x36   : > { %3420 = vmatprep.mubr.msk.f32.mxu1 %vm354_vm1, %v350_v38  ;;  %3536 = vmatprep.mubr.msk.f32.mxu0 %vm354_vm1, %v1296_v39  ;;  %v2030_v37 = vld [vmem:[%s4009_s22 + $0x25] sm:$0xff]  ;;  %v2031_v38 = vld [vmem:[%s4009_s22 + $0x2d] sm:$0xff]  ;;  %v2032_v39 = vld [vmem:[%s4009_s22 + $0x35] sm:$0xff] }
  0x39   : > { %3421 = vmatmul.mubr.msk.f32.gmra.mrb[16].mxu1 %vm354_vm1, %v351_v40  ;;  %3537 = vmatmul.mubr.msk.f32.gmra.mrb[16].mxu0 %vm354_vm1, %v1297_v41  ;;  %v2033_v40 = vld [vmem:[%s4009_s22 + $0x3d] sm:$0xff]  ;;  %v2034_v41 = vld [vmem:[%s4009_s22 + $0x45] sm:$0xff] }
  0x3a   : > { %3425 = vmatprep.mubr.msk.f32.mxu1 %vm354_vm1, %v315_v42  ;;  %3541 = vmatprep.mubr.msk.f32.mxu0 %vm354_vm1, %v1530_v43  ;;  %v2035_v42 = vld [vmem:[%s4009_s22 + $0x4d] sm:$0xff]  ;;  %v2036_v43 = vld [vmem:[%s4009_s22 + $0x55] sm:$0xff] }
  0x3d   : > { %3426 = vmatmul.mubr.msk.f32.vlgmr.msra.gmra.mrb[0].mxu1 %vm354_vm1, %v316_v44  ;;  %3542 = vmatmul.mubr.msk.f32.vlgmr.msra.gmra.mrb[0].mxu0 %vm354_vm1, %v1531_v45  ;;  %v2037_v44 = vld [vmem:[%s4009_s22 + $0x5d] sm:$0xff]  ;;  %v2038_v45 = vld [vmem:[%s4009_s22 + $0x65] sm:$0xff] }
  0x3e   : > { %3569 = vmatpush3.msk.msra.mxu0 %vm409_vm0, %v4024_v10  ;;  %3428 = vmatprep.mubr.msk.f32.mxu1 %vm354_vm1, %v317_v46  ;;  %v330_v10 = vld [vmem:[%s4009_s22 + $0x78] sm:$0xff]  ;;  %v2039_v46 = vld [vmem:[%s4009_s22 + $0x6d] sm:$0xff] }
  0x3f   : > { %3544 = vmatprep.mubr.msk.f32.mxu0 %vm354_vm1, %v4107_v47  ;;  %3453 = vmatpush3.msk.msra.mxu1 %vm409_vm0, %v4029_v11  ;;  %v1545_v11 = vld [vmem:[%s4009_s22 + $0x8c] sm:$0xff] }
  0x40   : > { %3597 = vmatprep.subr.msk.mxu0 %vm409_vm0, %v4114_v48  ;;  %3481 = vmatprep.subr.msk.mxu1 %vm409_vm0, %v4119_v49 }
  0x41   : > { %3429 = vmatmul.mubr.msk.f32.gmra.mrb[2].mxu1 %vm354_vm1, %v318_v50  ;;  %3545 = vmatmul.mubr.msk.f32.gmra.mrb[2].mxu0 %vm354_vm1, %v4126_v51  ;;  %v2043_v50 = vld [vmem:[%s4009_s22 + $0x8d] sm:$0xff] }
  0x42   : > { %3431 = vmatprep.mubr.msk.f32.mxu1 %vm354_vm1, %v319_v52  ;;  %3547 = vmatprep.mubr.msk.f32.mxu0 %vm354_vm1, %v4132_v53  ;;  %v2045_v52 = vld [vmem:[%s4009_s22 + $0x9d] sm:$0xff] }
  0x45   : > { %3432 = vmatmul.mubr.msk.f32.gmra.mrb[4].mxu1 %vm354_vm1, %v320_v54  ;;  %3548 = vmatmul.mubr.msk.f32.gmra.mrb[4].mxu0 %vm354_vm1, %v4148_v55  ;;  %v2046_v54 = vld [vmem:[%s4009_s22 + $0xa5] sm:$0xff] }
  0x46   : > { %3434 = vmatprep.mubr.msk.f32.mxu1 %vm354_vm1, %v321_v56  ;;  %3550 = vmatprep.mubr.msk.f32.mxu0 %vm354_vm1, %v4152_v57  ;;  %v2047_v56 = vld [vmem:[%s4009_s22 + $0xad] sm:$0xff] }
  0x49   : > { %3435 = vmatmul.mubr.msk.f32.gmra.mrb[6].mxu1 %vm354_vm1, %v322_v58  ;;  %3551 = vmatmul.mubr.msk.f32.gmra.mrb[6].mxu0 %vm354_vm1, %v4162_v59  ;;  %v2281_v58 = vld [vmem:[%s4009_s22 + $0x2e] sm:$0xff] }
  0x4a   : > { %3437 = vmatprep.mubr.msk.f32.mxu1 %vm354_vm1, %v323_v60  ;;  %3553 = vmatprep.mubr.msk.f32.mxu0 %vm354_vm1, %v4166_v61  ;;  %v2283_v60 = vld [vmem:[%s4009_s22 + $0x3e] sm:$0xff] }
  0x4d   : > { %3438 = vmatmul.mubr.msk.f32.gmra.mrb[8].mxu1 %vm354_vm1, %v324_v62  ;;  %3554 = vmatmul.mubr.msk.f32.gmra.mrb[8].mxu0 %vm354_vm1, %v4176_v63  ;;  %v2285_v62 = vld [vmem:[%s4009_s22 + $0x4e] sm:$0xff] }
  0x4e   : > { %3440 = vmatprep.mubr.msk.f32.mxu1 %vm354_vm1, %v325_v0  ;;  %3556 = vmatprep.mubr.msk.f32.mxu0 %vm354_vm1, %v4180_v1  ;;  %v2287_v0 = vld [vmem:[%s4009_s22 + $0x5e] sm:$0xff] }
  0x51   : > { %3441 = vmatmul.mubr.msk.f32.gmra.mrb[10].mxu1 %vm354_vm1, %v326_v2  ;;  %3557 = vmatmul.mubr.msk.f32.gmra.mrb[10].mxu0 %vm354_vm1, %v1541_v3  ;;  %v2289_v2 = vld [vmem:[%s4009_s22 + $0x6e] sm:$0xff] }
  0x52   : > { %3443 = vmatprep.mubr.msk.f32.mxu1 %vm354_vm1, %v327_v4  ;;  %3559 = vmatprep.mubr.msk.f32.mxu0 %vm354_vm1, %v1542_v5  ;;  %v2291_v4 = vld [vmem:[%s4009_s22 + $0x7e] sm:$0xff] }
  0x55   : > { %3444 = vmatmul.mubr.msk.f32.gmra.mrb[12].mxu1 %vm354_vm1, %v328_v6  ;;  %3560 = vmatmul.mubr.msk.f32.gmra.mrb[12].mxu0 %vm354_vm1, %v1543_v7  ;;  %v2293_v6 = vld [vmem:[%s4009_s22 + $0x8e] sm:$0xff] }
  0x56   : > { %3446 = vmatprep.mubr.msk.f32.mxu1 %vm354_vm1, %v329_v8  ;;  %3562 = vmatprep.mubr.msk.f32.mxu0 %vm354_vm1, %v1544_v9  ;;  %v2295_v8 = vld [vmem:[%s4009_s22 + $0x9e] sm:$0xff] }
  0x59   : > { %3447 = vmatmul.mubr.msk.f32.gmra.mrb[14].mxu1 %vm354_vm1, %v330_v10  ;;  %3563 = vmatmul.mubr.msk.f32.gmra.mrb[14].mxu0 %vm354_vm1, %v1545_v11  ;;  %v2297_v10 = vld [vmem:[%s4009_s22 + $0xae] sm:$0xff] }
  0x5a   : > { %3449 = vmatprep.mubr.msk.f32.mxu1 %vm354_vm1, %v331_v12  ;;  %3565 = vmatprep.mubr.msk.f32.mxu0 %vm354_vm1, %v1546_v13 }
  0x5d   : > { %3450 = vmatmul.mubr.msk.f32.gmra.mrb[16].mxu1 %vm354_vm1, %v332_v14  ;;  %3566 = vmatmul.mubr.msk.f32.gmra.mrb[16].mxu0 %vm354_vm1, %v1547_v15 }
  0x5e   : > { %3454 = vmatprep.mubr.msk.f32.mxu1 %vm354_vm1, %v780_v16  ;;  %3570 = vmatprep.mubr.msk.f32.mxu0 %vm354_vm1, %v4107_v47  ;;  %v2040_v47 = vld [vmem:[%s4009_s22 + $0x75] sm:$0xff] }
  0x61   : > { %3455 = vmatmul.mubr.msk.f32.vlgmr.msra.gmra.mrb[0].mxu1 %vm354_vm1, %v781_v17  ;;  %3571 = vmatmul.mubr.msk.f32.vlgmr.msra.gmra.mrb[0].mxu0 %vm354_vm1, %v4126_v51  ;;  %v2044_v51 = vld [vmem:[%s4009_s22 + $0x95] sm:$0xff] }
  0x62   : > { %3598 = vmatpush3.msk.msra.mxu0 %vm409_vm0, %v4114_v48  ;;  %3457 = vmatprep.mubr.msk.f32.mxu1 %vm354_vm1, %v782_v18  ;;  %v2041_v48 = vld [vmem:[%s4009_s22 + $0x7d] sm:$0xff] }
  0x63   : > { %3573 = vmatprep.mubr.msk.f32.mxu0 %vm354_vm1, %v4132_v53  ;;  %3482 = vmatpush3.msk.msra.mxu1 %vm409_vm0, %v4119_v49  ;;  %v2042_v49 = vld [vmem:[%s4009_s22 + $0x85] sm:$0xff]  ;;  %v1046_v53 = vld [vmem:[%s4009_s22 + $0x92] sm:$0xff] }
  0x64   : > { %3626 = vmatprep.subr.msk.mxu0 %vm409_vm0, %v3159_v19 }
  0x65   : > { %3458 = vmatmul.mubr.msk.f32.gmra.mrb[2].mxu1 %vm354_vm1, %v783_v20  ;;  %3574 = vmatmul.mubr.msk.f32.gmra.mrb[2].mxu0 %vm354_vm1, %v4148_v55  ;;  %v1047_v55 = vld [vmem:[%s4009_s22 + $0x9a] sm:$0xff] }
  0x66   : > { %3460 = vmatprep.mubr.msk.f32.mxu1 %vm354_vm1, %v784_v21  ;;  %3576 = vmatprep.mubr.msk.f32.mxu0 %vm354_vm1, %v4152_v57  ;;  %v2280_v57 = vld [vmem:[%s4009_s22 + $0x26] sm:$0xff] }
  0x69   : > { %3461 = vmatmul.mubr.msk.f32.gmra.mrb[4].mxu1 %vm354_vm1, %v785_v22  ;;  %3577 = vmatmul.mubr.msk.f32.gmra.mrb[4].mxu0 %vm354_vm1, %v4162_v59  ;;  %v2282_v59 = vld [vmem:[%s4009_s22 + $0x36] sm:$0xff] }
  0x6a   : > { %3463 = vmatprep.mubr.msk.f32.mxu1 %vm354_vm1, %v786_v23  ;;  %3579 = vmatprep.mubr.msk.f32.mxu0 %vm354_vm1, %v4166_v61  ;;  %v2284_v61 = vld [vmem:[%s4009_s22 + $0x46] sm:$0xff] }
  0x6d   : > { %3464 = vmatmul.mubr.msk.f32.gmra.mrb[6].mxu1 %vm354_vm1, %v787_v24  ;;  %3580 = vmatmul.mubr.msk.f32.gmra.mrb[6].mxu0 %vm354_vm1, %v4176_v63  ;;  %v2286_v63 = vld [vmem:[%s4009_s22 + $0x56] sm:$0xff] }
  0x6e   : > { %3466 = vmatprep.mubr.msk.f32.mxu1 %vm354_vm1, %v788_v25  ;;  %3582 = vmatprep.mubr.msk.f32.mxu0 %vm354_vm1, %v4180_v1  ;;  %v2288_v1 = vld [vmem:[%s4009_s22 + $0x66] sm:$0xff] }
  0x71   : > { %3467 = vmatmul.mubr.msk.f32.gmra.mrb[8].mxu1 %vm354_vm1, %v789_v26  ;;  %3583 = vmatmul.mubr.msk.f32.gmra.mrb[8].mxu0 %vm354_vm1, %v1541_v3  ;;  %v2290_v3 = vld [vmem:[%s4009_s22 + $0x76] sm:$0xff] }
  0x72   : > { %3469 = vmatprep.mubr.msk.f32.mxu1 %vm354_vm1, %v790_v27  ;;  %3585 = vmatprep.mubr.msk.f32.mxu0 %vm354_vm1, %v1542_v5  ;;  %v2292_v5 = vld [vmem:[%s4009_s22 + $0x86] sm:$0xff] }
  0x75   : > { %3470 = vmatmul.mubr.msk.f32.gmra.mrb[10].mxu1 %vm354_vm1, %v791_v28  ;;  %3586 = vmatmul.mubr.msk.f32.gmra.mrb[10].mxu0 %vm354_vm1, %v1543_v7  ;;  %v2294_v7 = vld [vmem:[%s4009_s22 + $0x96] sm:$0xff] }
  0x76   : > { %3472 = vmatprep.mubr.msk.f32.mxu1 %vm354_vm1, %v792_v29  ;;  %3588 = vmatprep.mubr.msk.f32.mxu0 %vm354_vm1, %v1544_v9  ;;  %v2296_v9 = vld [vmem:[%s4009_s22 + $0xa6] sm:$0xff] }
  0x79   : > { %3473 = vmatmul.mubr.msk.f32.gmra.mrb[12].mxu1 %vm354_vm1, %v793_v30  ;;  %3589 = vmatmul.mubr.msk.f32.gmra.mrb[12].mxu0 %vm354_vm1, %v1545_v11  ;;  %v2598_v11 = vld [vmem:[%s4583_s4] sm:$0xf] }
  0x7a   : > { %3475 = vmatprep.mubr.msk.f32.mxu1 %vm354_vm1, %v794_v31  ;;  %3591 = vmatprep.mubr.msk.f32.mxu0 %vm354_vm1, %v1546_v13 }
  0x7b   : > { %3655 = vmatprep.subr.msk.mxu1 %vm409_vm0, %v2598_v11 }
  0x7d   : > { %3476 = vmatmul.mubr.msk.f32.gmra.mrb[14].mxu1 %vm354_vm1, %v795_v32  ;;  %3592 = vmatmul.mubr.msk.f32.gmra.mrb[14].mxu0 %vm354_vm1, %v1547_v15 }
  0x7e   : > { %3478 = vmatprep.mubr.msk.f32.mxu1 %vm354_vm1, %v796_v33  ;;  %3594 = vmatprep.mubr.msk.f32.mxu0 %vm354_vm1, %v1796_v34  ;;  %v4411_v34 = vld [vmem:[%s4582_s3] ss:$0 sm:$0xff] }
  0x81   : > { %3479 = vmatmul.mubr.msk.f32.gmra.mrb[16].mxu1 %vm354_vm1, %v797_v35  ;;  %3595 = vmatmul.mubr.msk.f32.gmra.mrb[16].mxu0 %vm354_vm1, %v1797_v36 }
  0x82   : > { %3483 = vmatprep.mubr.msk.f32.mxu1 %vm354_vm1, %v782_v18  ;;  %3599 = vmatprep.mubr.msk.f32.mxu0 %vm354_vm1, %v2030_v37 }
  0x85   : > { %3484 = vmatmul.mubr.msk.f32.vlgmr.msra.gmra.mrb[0].mxu1 %vm354_vm1, %v783_v20  ;;  %3600 = vmatmul.mubr.msk.f32.vlgmr.msra.gmra.mrb[0].mxu0 %vm354_vm1, %v2031_v38 }
  0x86   : > { %3627 = vmatpush3.msk.msra.mxu0 %vm409_vm0, %v3159_v19  ;;  %3486 = vmatprep.mubr.msk.f32.mxu1 %vm354_vm1, %v784_v21 }
  0x87   : > { %3602 = vmatprep.mubr.msk.f32.mxu0 %vm354_vm1, %v2032_v39  ;;  %3656 = vmatpush3.msk.msra.mxu1 %vm409_vm0, %v2598_v11 }
  0x89   : > { %3487 = vmatmul.mubr.msk.f32.gmra.mrb[2].mxu1 %vm354_vm1, %v785_v22  ;;  %3603 = vmatmul.mubr.msk.f32.gmra.mrb[2].mxu0 %vm354_vm1, %v2033_v40 }
  0x8a   : > { %3489 = vmatprep.mubr.msk.f32.mxu1 %vm354_vm1, %v786_v23  ;;  %3605 = vmatprep.mubr.msk.f32.mxu0 %vm354_vm1, %v2034_v41 }
  0x8d   : > { %3490 = vmatmul.mubr.msk.f32.gmra.mrb[4].mxu1 %vm354_vm1, %v787_v24  ;;  %3606 = vmatmul.mubr.msk.f32.gmra.mrb[4].mxu0 %vm354_vm1, %v2035_v42 }
  0x8e   : > { %3492 = vmatprep.mubr.msk.f32.mxu1 %vm354_vm1, %v788_v25  ;;  %3608 = vmatprep.mubr.msk.f32.mxu0 %vm354_vm1, %v2036_v43 }
  0x91   : > { %3493 = vmatmul.mubr.msk.f32.gmra.mrb[6].mxu1 %vm354_vm1, %v789_v26  ;;  %3609 = vmatmul.mubr.msk.f32.gmra.mrb[6].mxu0 %vm354_vm1, %v2037_v44 }
  0x92   : > { %3495 = vmatprep.mubr.msk.f32.mxu1 %vm354_vm1, %v790_v27  ;;  %3611 = vmatprep.mubr.msk.f32.mxu0 %vm354_vm1, %v2038_v45 }
  0x95   : > { %3496 = vmatmul.mubr.msk.f32.gmra.mrb[8].mxu1 %vm354_vm1, %v791_v28  ;;  %3612 = vmatmul.mubr.msk.f32.gmra.mrb[8].mxu0 %vm354_vm1, %v2039_v46 }
  0x96   : > { %3498 = vmatprep.mubr.msk.f32.mxu1 %vm354_vm1, %v792_v29  ;;  %3614 = vmatprep.mubr.msk.f32.mxu0 %vm354_vm1, %v2040_v47 }
  0x99   : > { %3499 = vmatmul.mubr.msk.f32.gmra.mrb[10].mxu1 %vm354_vm1, %v793_v30  ;;  %3615 = vmatmul.mubr.msk.f32.gmra.mrb[10].mxu0 %vm354_vm1, %v2041_v48 }
  0x9a   : > { %3501 = vmatprep.mubr.msk.f32.mxu1 %vm354_vm1, %v794_v31  ;;  %3617 = vmatprep.mubr.msk.f32.mxu0 %vm354_vm1, %v2042_v49  ;;  %v4406_v31 = vld [vmem:[%s4581_s2] ss:$0 sm:$0xff] }
  0x9d   : > { %3502 = vmatmul.mubr.msk.f32.gmra.mrb[12].mxu1 %vm354_vm1, %v795_v32  ;;  %3618 = vmatmul.mubr.msk.f32.gmra.mrb[12].mxu0 %vm354_vm1, %v2043_v50 }
  0x9e   : > { %3504 = vmatprep.mubr.msk.f32.mxu1 %vm354_vm1, %v796_v33  ;;  %3620 = vmatprep.mubr.msk.f32.mxu0 %vm354_vm1, %v2044_v51 }
  0xa1   : > { %3505 = vmatmul.mubr.msk.f32.gmra.mrb[14].mxu1 %vm354_vm1, %v797_v35  ;;  %3621 = vmatmul.mubr.msk.f32.gmra.mrb[14].mxu0 %vm354_vm1, %v2045_v52 }
  0xa2   : > { %3507 = vmatprep.mubr.msk.f32.mxu1 %vm354_vm1, %v1046_v53  ;;  %3623 = vmatprep.mubr.msk.f32.mxu0 %vm354_vm1, %v2046_v54 }
  0xa5   : > { %3508 = vmatmul.mubr.msk.f32.gmra.mrb[16].mxu1 %vm354_vm1, %v1047_v55  ;;  %3624 = vmatmul.mubr.msk.f32.gmra.mrb[16].mxu0 %vm354_vm1, %v2047_v56 }
  0xa6   : > { %3628 = vmatprep.mubr.msk.f32.mxu0 %vm354_vm1, %v2280_v57 }
  0xa9   : > { %3629 = vmatmul.mubr.msk.f32.vlgmr.msra.gmra.mrb[0].mxu0 %vm354_vm1, %v2281_v58 }
  0xaa   : > { %3631 = vmatprep.mubr.msk.f32.mxu0 %vm354_vm1, %v2282_v59 }
  0xad   : > { %3632 = vmatmul.mubr.msk.f32.gmra.mrb[2].mxu0 %vm354_vm1, %v2283_v60 }
  0xae   : > { %3634 = vmatprep.mubr.msk.f32.mxu0 %vm354_vm1, %v2284_v61 }
  0xb1   : > { %3635 = vmatmul.mubr.msk.f32.gmra.mrb[4].mxu0 %vm354_vm1, %v2285_v62 }
  0xb2   : > { %3637 = vmatprep.mubr.msk.f32.mxu0 %vm354_vm1, %v2286_v63 }
  0xb5   : > { %3638 = vmatmul.mubr.msk.f32.gmra.mrb[6].mxu0 %vm354_vm1, %v2287_v0 }
  0xb6   : > { %3640 = vmatprep.mubr.msk.f32.mxu0 %vm354_vm1, %v2288_v1 }
  0xb9   : > { %3641 = vmatmul.mubr.msk.f32.gmra.mrb[8].mxu0 %vm354_vm1, %v2289_v2 }
  0xba   : > { %3643 = vmatprep.mubr.msk.f32.mxu0 %vm354_vm1, %v2290_v3 }
  0xbd   : > { %3644 = vmatmul.mubr.msk.f32.gmra.mrb[10].mxu0 %vm354_vm1, %v2291_v4 }
  0xbe   : > { %3646 = vmatprep.mubr.msk.f32.mxu0 %vm354_vm1, %v2292_v5 }
  0xc1   : > { %3647 = vmatmul.mubr.msk.f32.gmra.mrb[12].mxu0 %vm354_vm1, %v2293_v6 }
  0xc2   : > { %3649 = vmatprep.mubr.msk.f32.mxu0 %vm354_vm1, %v2294_v7 }
  0xc5   : > { %3650 = vmatmul.mubr.msk.f32.gmra.mrb[14].mxu0 %vm354_vm1, %v2295_v8 }
  0xc6   : > { %3652 = vmatprep.mubr.msk.f32.mxu0 %vm354_vm1, %v2296_v9 }
  0xc9   : > { %3653 = vmatmul.mubr.msk.f32.gmra.mrb[16].mxu0 %vm354_vm1, %v2297_v10 }
 0x158   : > { %v3485_v12 = vpop.f32.mrb[0].mxu1 }
 0x159   : > { %v1173_v13 = vpop.f32.mrb[1].mxu1 }
 0x15c   : > { %v3488_v14 = vpop.f32.mrb[2].mxu1 }
 0x15d   : > { %v1183_v15 = vpop.f32.mrb[3].mxu1 }
 0x160   : > { %v3491_v16 = vpop.f32.mrb[4].mxu1 }
 0x161   : > { %v1193_v17 = vpop.f32.mrb[5].mxu1 }
 0x164   : > { %v3494_v18 = vpop.f32.mrb[6].mxu1 }
 0x165   : > { %v1203_v19 = vpop.f32.mrb[7].mxu1 }
 0x168   : > { %v3497_v20 = vpop.f32.mrb[8].mxu1 }
 0x169   : > { %v1213_v21 = vpop.f32.mrb[9].mxu1 }
 0x16c   : > { %v4387_v22 = vpop.f32.mrb[10].mxu1 }
 0x16d   : > { %v4389_v23 = vpop.f32.mrb[11].mxu1 }
 0x170   : > { %v4391_v24 = vpop.f32.mrb[12].mxu1 }
 0x171   : > { %v4393_v25 = vpop.f32.mrb[13].mxu1 }
 0x174   : > { %v4395_v26 = vpop.f32.mrb[14].mxu1 }
 0x175   : > { %v4397_v27 = vpop.f32.mrb[15].mxu1 }
 0x178   : > { %v4399_v28 = vpop.f32.mrb[16].mxu1 }
 0x179   : > { %v4401_v29 = vpop.f32.mrb[17].mxu1 }
 0x17c   : > { %v3630_v30 = vpop.f32.mrb[0].mxu0 }
 0x17d   : > { %v3684_v32 = vadd.f32 %v3630_v30, %v3485_v12  ;;  %v2423_v33 = vpop.f32.mrb[1].mxu0 }
 0x17e   : > { %v3685_v35 = vadd.f32 %v2423_v33, %v1173_v13 }
 0x17f   : > { %v2538_v36 = vmul.f32 %v3684_v32, %v4406_v31 }
 0x180   : > { %v2537_v37 = vmul.f32 %v3685_v35, %v4406_v31  ;;  %v3633_v38 = vpop.f32.mrb[2].mxu0 }
 0x181   : > { %v2563_v39 = vadd.f32 %v4411_v34, %v2538_v36  ;;  %v3686_v40 = vadd.f32 %v3633_v38, %v3488_v14  ;;  %v2433_v41 = vpop.f32.mrb[3].mxu0 }
 0x182   : > { %v2562_v42 = vadd.f32 %v4411_v34, %v2537_v37  ;;  %v3687_v43 = vadd.f32 %v2433_v41, %v1183_v15 }
 0x183   : > { %v2540_v44 = vmul.f32 %v3686_v40, %v4406_v31  ;;  %v2581_v48 = vmax.f32 %v2563_v39, 0.0 }
 0x184   : > { %v2580_v45 = vmax.f32 %v2562_v42, 0.0  ;;  %v2539_v46 = vmul.f32 %v3687_v43, %v4406_v31  ;;  %v3636_v47 = vpop.f32.mrb[4].mxu0 }
 0x185   : > { %v2565_v49 = vadd.f32 %v4411_v34, %v2540_v44  ;;  %v3688_v50 = vadd.f32 %v3636_v47, %v3491_v16  ;;  %v2443_v51 = vpop.f32.mrb[5].mxu0 }
 0x186   : > { %v2564_v52 = vadd.f32 %v4411_v34, %v2539_v46  ;;  %v3689_v53 = vadd.f32 %v2443_v51, %v1193_v17  ;;  %3657 = vmatprep.mubr.msk.f32.mxu1 %vm354_vm1, %v2580_v45 }
 0x187   : > { %v2542_v54 = vmul.f32 %v3688_v50, %v4406_v31  ;;  %3658 = vmatmul.mubr.msk.f32.vlgmr.msra.gmra.mrb[18].mxu1 %vm354_vm1, %v2581_v48  ;;  %v2583_v58 = vmax.f32 %v2565_v49, 0.0 }
 0x188   : > { %v2582_v55 = vmax.f32 %v2564_v52, 0.0  ;;  %v2541_v56 = vmul.f32 %v3689_v53, %v4406_v31  ;;  %v3639_v57 = vpop.f32.mrb[6].mxu0 }
 0x189   : > { %v2567_v59 = vadd.f32 %v4411_v34, %v2542_v54  ;;  %v3690_v60 = vadd.f32 %v3639_v57, %v3494_v18  ;;  %v2453_v61 = vpop.f32.mrb[7].mxu0 }
 0x18a   : > { %v2566_v62 = vadd.f32 %v4411_v34, %v2541_v56  ;;  %v3691_v63 = vadd.f32 %v2453_v61, %v1203_v19  ;;  %3660 = vmatprep.mubr.msk.f32.mxu1 %vm354_vm1, %v2582_v55 }
 0x18b   : > { %v2544_v0 = vmul.f32 %v3690_v60, %v4406_v31  ;;  %3661 = vmatmul.mubr.msk.f32.gmra.mrb[20].mxu1 %vm354_vm1, %v2583_v58  ;;  %v2585_v4 = vmax.f32 %v2567_v59, 0.0 }
 0x18c   : > { %v2584_v1 = vmax.f32 %v2566_v62, 0.0  ;;  %v2543_v2 = vmul.f32 %v3691_v63, %v4406_v31  ;;  %v3642_v3 = vpop.f32.mrb[8].mxu0 }
 0x18d   : > { %v2569_v5 = vadd.f32 %v4411_v34, %v2544_v0  ;;  %v3692_v6 = vadd.f32 %v3642_v3, %v3497_v20  ;;  %v2463_v7 = vpop.f32.mrb[9].mxu0 }
 0x18e   : > { %v2568_v8 = vadd.f32 %v4411_v34, %v2543_v2  ;;  %v3693_v9 = vadd.f32 %v2463_v7, %v1213_v21  ;;  %3663 = vmatprep.mubr.msk.f32.mxu1 %vm354_vm1, %v2584_v1 }
 0x18f   : > { %v2546_v10 = vmul.f32 %v3692_v6, %v4406_v31  ;;  %3664 = vmatmul.mubr.msk.f32.gmra.mrb[22].mxu1 %vm354_vm1, %v2585_v4  ;;  %v2587_v14 = vmax.f32 %v2569_v5, 0.0 }
 0x190   : > { %v2586_v11 = vmax.f32 %v2568_v8, 0.0  ;;  %v2545_v12 = vmul.f32 %v3693_v9, %v4406_v31  ;;  %v3645_v13 = vpop.f32.mrb[10].mxu0 }
 0x191   : > { %v2571_v15 = vadd.f32 %v4411_v34, %v2546_v10  ;;  %v3694_v16 = vadd.f32 %v3645_v13, %v4387_v22  ;;  %v2473_v17 = vpop.f32.mrb[11].mxu0 }
 0x192   : > { %v2570_v18 = vadd.f32 %v4411_v34, %v2545_v12  ;;  %v3695_v19 = vadd.f32 %v2473_v17, %v4389_v23  ;;  %3666 = vmatprep.mubr.msk.f32.mxu1 %vm354_vm1, %v2586_v11 }
 0x193   : > { %v2548_v20 = vmul.f32 %v3694_v16, %v4406_v31  ;;  %3667 = vmatmul.mubr.msk.f32.gmra.mrb[24].mxu1 %vm354_vm1, %v2587_v14  ;;  %v2589_v33 = vmax.f32 %v2571_v15, 0.0 }
 0x194   : > { %v2588_v21 = vmax.f32 %v2570_v18, 0.0  ;;  %v2547_v30 = vmul.f32 %v3695_v19, %v4406_v31  ;;  %v3648_v32 = vpop.f32.mrb[12].mxu0 }
 0x195   : > { %v2573_v35 = vadd.f32 %v4411_v34, %v2548_v20  ;;  %v3696_v22 = vadd.f32 %v3648_v32, %v4391_v24  ;;  %v2483_v36 = vpop.f32.mrb[13].mxu0 }
 0x196   : > { %v2572_v37 = vadd.f32 %v4411_v34, %v2547_v30  ;;  %v3697_v23 = vadd.f32 %v2483_v36, %v4393_v25  ;;  %3669 = vmatprep.mubr.msk.f32.mxu1 %vm354_vm1, %v2588_v21 }
 0x197   : > { %v2550_v38 = vmul.f32 %v3696_v22, %v4406_v31  ;;  %3670 = vmatmul.mubr.msk.f32.gmra.mrb[26].mxu1 %vm354_vm1, %v2589_v33  ;;  %v2591_v42 = vmax.f32 %v2573_v35, 0.0 }
 0x198   : > { %v2590_v39 = vmax.f32 %v2572_v37, 0.0  ;;  %v2549_v40 = vmul.f32 %v3697_v23, %v4406_v31  ;;  %v3651_v41 = vpop.f32.mrb[14].mxu0 }
 0x199   : > { %v2575_v43 = vadd.f32 %v4411_v34, %v2550_v38  ;;  %v3698_v24 = vadd.f32 %v3651_v41, %v4395_v26  ;;  %v2493_v44 = vpop.f32.mrb[15].mxu0 }
 0x19a   : > { %v2574_v45 = vadd.f32 %v4411_v34, %v2549_v40  ;;  %v3699_v25 = vadd.f32 %v2493_v44, %v4397_v27  ;;  %3672 = vmatprep.mubr.msk.f32.mxu1 %vm354_vm1, %v2590_v39 }
 0x19b   : > { %v2552_v46 = vmul.f32 %v3698_v24, %v4406_v31  ;;  %3673 = vmatmul.mubr.msk.f32.gmra.mrb[28].mxu1 %vm354_vm1, %v2591_v42  ;;  %v2593_v50 = vmax.f32 %v2575_v43, 0.0 }
 0x19c   : > { %v2592_v47 = vmax.f32 %v2574_v45, 0.0  ;;  %v2551_v48 = vmul.f32 %v3699_v25, %v4406_v31  ;;  %v3654_v49 = vpop.f32.mrb[16].mxu0 }
 0x19d   : > { %v2577_v51 = vadd.f32 %v4411_v34, %v2552_v46  ;;  %v3700_v26 = vadd.f32 %v3654_v49, %v4399_v28  ;;  %v2503_v52 = vpop.f32.mrb[17].mxu0 }
 0x19e   : > { %v2576_v53 = vadd.f32 %v4411_v34, %v2551_v48  ;;  %v3701_v27 = vadd.f32 %v2503_v52, %v4401_v29  ;;  %3675 = vmatprep.mubr.msk.f32.mxu1 %vm354_vm1, %v2592_v47 }
 0x19f   : > { %v2554_v54 = vmul.f32 %v3700_v26, %v4406_v31  ;;  %3676 = vmatmul.mubr.msk.f32.gmra.mrb[30].mxu1 %vm354_vm1, %v2593_v50  ;;  %v2595_v57 = vmax.f32 %v2577_v51, 0.0 }
 0x1a0   : > { %v2594_v55 = vmax.f32 %v2576_v53, 0.0  ;;  %v2553_v56 = vmul.f32 %v3701_v27, %v4406_v31  ;;  %v4480_v31 = vld [vmem:[%s4584_s5] ss:$0 sm:$0xff] }
 0x1a1   : > { %v2579_v58 = vadd.f32 %v4411_v34, %v2554_v54 }
 0x1a2   : > { %v2578_v28 = vadd.f32 %v4411_v34, %v2553_v56  ;;  %3678 = vmatprep.mubr.msk.f32.mxu1 %vm354_vm1, %v2594_v55  ;;  %v4485_v34 = vld [vmem:[%s4585_s6] ss:$0 sm:$0xff] }
 0x1a3   : > { %3679 = vmatmul.mubr.msk.f32.gmra.mrb[32].mxu1 %vm354_vm1, %v2595_v57  ;;  %v2597_v59 = vmax.f32 %v2579_v58, 0.0 }
 0x1a4   : > { %v2596_v29 = vmax.f32 %v2578_v28, 0.0 }
 0x1a6   : > { %3681 = vmatprep.mubr.msk.f32.mxu1 %vm354_vm1, %v2596_v29 }
 0x1a7   : > { %3682 = vmatmul.mubr.msk.f32.gmra.mrb[34].mxu1 %vm354_vm1, %v2597_v59 }
 0x25a   : > { %v3659_v60 = vpop.f32.mrb[18].mxu1 }
 0x25b   : > { %v2819_v61 = vmul.f32 %v3659_v60, %v4480_v31  ;;  %v2722_v62 = vpop.f32.mrb[19].mxu1 }
 0x25c   : > { %v2818_v63 = vmul.f32 %v4480_v31, %v2722_v62 }
 0x25d   : > { %v2844_v0 = vadd.f32 %v4485_v34, %v2819_v61 }
 0x25e   : > { %v2843_v1 = vadd.f32 %v4485_v34, %v2818_v63  ;;  %v3662_v2 = vpop.f32.mrb[20].mxu1 }
 0x25f   : > { %v2862_v3 = vmax.f32 %v2844_v0, 0.0  ;;  %v2821_v4 = vmul.f32 %v3662_v2, %v4480_v31  ;;  %v2732_v5 = vpop.f32.mrb[21].mxu1 }
 0x260   : > { %v2861_v6 = vmax.f32 %v2843_v1, 0.0  ;;  %v2820_v7 = vmul.f32 %v4480_v31, %v2732_v5 }
 0x261   : > { %2881 = vst.msk [vmem:[%s4493_s15 + $0x8] sm:$0xff] %vm2879_vm2, %v2862_v3  ;;  %v2846_v8 = vadd.f32 %v4485_v34, %v2821_v4 }
 0x262   : > { %2880 = vst.msk [vmem:[%s4493_s15] sm:$0xff] %vm2879_vm2, %v2861_v6  ;;  %v2845_v9 = vadd.f32 %v4485_v34, %v2820_v7  ;;  %v3665_v10 = vpop.f32.mrb[22].mxu1 }
 0x263   : > { %v2864_v11 = vmax.f32 %v2846_v8, 0.0  ;;  %v2823_v12 = vmul.f32 %v3665_v10, %v4480_v31  ;;  %v2742_v13 = vpop.f32.mrb[23].mxu1 }
 0x264   : > { %v2863_v14 = vmax.f32 %v2845_v9, 0.0  ;;  %v2822_v15 = vmul.f32 %v4480_v31, %v2742_v13 }
 0x265   : > { %2883 = vst.msk [vmem:[%s4493_s15 + $0x18] sm:$0xff] %vm2879_vm2, %v2864_v11  ;;  %v2848_v16 = vadd.f32 %v4485_v34, %v2823_v12 }
 0x266   : > { %2882 = vst.msk [vmem:[%s4493_s15 + $0x10] sm:$0xff] %vm2879_vm2, %v2863_v14  ;;  %v2847_v17 = vadd.f32 %v4485_v34, %v2822_v15  ;;  %v3668_v18 = vpop.f32.mrb[24].mxu1 }
 0x267   : > { %v2866_v19 = vmax.f32 %v2848_v16, 0.0  ;;  %v2825_v20 = vmul.f32 %v3668_v18, %v4480_v31  ;;  %v2752_v21 = vpop.f32.mrb[25].mxu1 }
 0x268   : > { %v2865_v30 = vmax.f32 %v2847_v17, 0.0  ;;  %v2824_v32 = vmul.f32 %v4480_v31, %v2752_v21 }
 0x269   : > { %2885 = vst.msk [vmem:[%s4493_s15 + $0x28] sm:$0xff] %vm2879_vm2, %v2866_v19  ;;  %v2850_v33 = vadd.f32 %v4485_v34, %v2825_v20 }
 0x26a   : > { %2884 = vst.msk [vmem:[%s4493_s15 + $0x20] sm:$0xff] %vm2879_vm2, %v2865_v30  ;;  %v2849_v35 = vadd.f32 %v4485_v34, %v2824_v32  ;;  %v3671_v22 = vpop.f32.mrb[26].mxu1 }
 0x26b   : > { %v2868_v36 = vmax.f32 %v2850_v33, 0.0  ;;  %v2827_v37 = vmul.f32 %v3671_v22, %v4480_v31  ;;  %v2762_v23 = vpop.f32.mrb[27].mxu1 }
 0x26c   : > { %v2867_v38 = vmax.f32 %v2849_v35, 0.0  ;;  %v2826_v39 = vmul.f32 %v4480_v31, %v2762_v23 }
 0x26d   : > { %2887 = vst.msk [vmem:[%s4493_s15 + $0x38] sm:$0xff] %vm2879_vm2, %v2868_v36  ;;  %v2852_v40 = vadd.f32 %v4485_v34, %v2827_v37 }
 0x26e   : > { %2886 = vst.msk [vmem:[%s4493_s15 + $0x30] sm:$0xff] %vm2879_vm2, %v2867_v38  ;;  %v2851_v41 = vadd.f32 %v4485_v34, %v2826_v39  ;;  %v3674_v42 = vpop.f32.mrb[28].mxu1 }
 0x26f   : > { %v2870_v43 = vmax.f32 %v2852_v40, 0.0  ;;  %v2829_v24 = vmul.f32 %v3674_v42, %v4480_v31  ;;  %v2772_v44 = vpop.f32.mrb[29].mxu1 }
 0x270   : > { %v2869_v45 = vmax.f32 %v2851_v41, 0.0  ;;  %v2828_v25 = vmul.f32 %v4480_v31, %v2772_v44 }
 0x271   : > { %2889 = vst.msk [vmem:[%s4493_s15 + $0x48] sm:$0xff] %vm2879_vm2, %v2870_v43  ;;  %v2854_v46 = vadd.f32 %v4485_v34, %v2829_v24 }
 0x272   : > { %2888 = vst.msk [vmem:[%s4493_s15 + $0x40] sm:$0xff] %vm2879_vm2, %v2869_v45  ;;  %v2853_v47 = vadd.f32 %v4485_v34, %v2828_v25  ;;  %v3677_v48 = vpop.f32.mrb[30].mxu1 }
 0x273   : > { %v2872_v49 = vmax.f32 %v2854_v46, 0.0  ;;  %v2831_v50 = vmul.f32 %v3677_v48, %v4480_v31  ;;  %v2782_v51 = vpop.f32.mrb[31].mxu1 }
 0x274   : > { %v2871_v26 = vmax.f32 %v2853_v47, 0.0  ;;  %v2830_v52 = vmul.f32 %v4480_v31, %v2782_v51 }
 0x275   : > { %2891 = vst.msk [vmem:[%s4493_s15 + $0x58] sm:$0xff] %vm2879_vm2, %v2872_v49  ;;  %v2856_v53 = vadd.f32 %v4485_v34, %v2831_v50 }
 0x276   : > { %2890 = vst.msk [vmem:[%s4493_s15 + $0x50] sm:$0xff] %vm2879_vm2, %v2871_v26  ;;  %v2855_v27 = vadd.f32 %v4485_v34, %v2830_v52  ;;  %v3680_v54 = vpop.f32.mrb[32].mxu1 }
 0x277   : > { %v2874_v55 = vmax.f32 %v2856_v53, 0.0  ;;  %v2833_v56 = vmul.f32 %v3680_v54, %v4480_v31  ;;  %v2792_v57 = vpop.f32.mrb[33].mxu1 }
 0x278   : > { %v2873_v58 = vmax.f32 %v2855_v27, 0.0  ;;  %v2832_v28 = vmul.f32 %v4480_v31, %v2792_v57 }
 0x279   : > { %2893 = vst.msk [vmem:[%s4493_s15 + $0x68] sm:$0xff] %vm2879_vm2, %v2874_v55  ;;  %v2858_v29 = vadd.f32 %v4485_v34, %v2833_v56 }
 0x27a   : > { %2892 = vst.msk [vmem:[%s4493_s15 + $0x60] sm:$0xff] %vm2879_vm2, %v2873_v58  ;;  %v2857_v59 = vadd.f32 %v4485_v34, %v2832_v28  ;;  %v3683_v60 = vpop.f32.mrb[34].mxu1 }
 0x27b   : > { %v2876_v61 = vmax.f32 %v2858_v29, 0.0  ;;  %v2835_v62 = vmul.f32 %v3683_v60, %v4480_v31  ;;  %v2802_v63 = vpop.f32.mrb[35].mxu1 }
 0x27c   : > { %v2875_v0 = vmax.f32 %v2857_v59, 0.0  ;;  %v2834_v1 = vmul.f32 %v4480_v31, %v2802_v63 }
 0x27d   : > { %2895 = vst.msk [vmem:[%s4493_s15 + $0x78] sm:$0xff] %vm2879_vm2, %v2876_v61  ;;  %v2860_v2 = vadd.f32 %v4485_v34, %v2835_v62 }
 0x27e   : > { %2894 = vst.msk [vmem:[%s4493_s15 + $0x70] sm:$0xff] %vm2879_vm2, %v2875_v0  ;;  %v2859_v3 = vadd.f32 %v4485_v34, %v2834_v1 }
 0x27f   : > { %v2878_v4 = vmax.f32 %v2860_v2, 0.0 }
 0x280   : > { %v2877_v5 = vmax.f32 %v2859_v3, 0.0 }
 0x281   : > { %2897 = vst.msk [vmem:[%s4493_s15 + $0x88] sm:$0xff] %vm2879_vm2, %v2878_v4 }
 0x282   : > { %2896 = vst.msk [vmem:[%s4493_s15 + $0x80] sm:$0xff] %vm2879_vm2, %v2877_v5 }
 0x283 PF: > { %s17_s28 = sadd.s32 1, %s3910_s28   ;;  %s4587_s24 = smov %s3902_s26 }
 0x284   : > { %p14_p7 = scmp.ge.s32.totalorder %s17_s28, 6   ;;  %s4588_s25 = smov %s3906_s27 }
 0x285   : > { %s4589_s26 = smov %s4592_s29  ;;  %s4590_s27 = smov %s4596_s30 }
 0x286   :  { %16 = sbr.rel (!%p14_p7) target bundleno = 3 (0x3), region = 86 }

</bundles_post_ra>
